<compile_context>
chip_gen: v7x
topology: tpu7x:2x2x1
jax: 0.10.0
libtpu: 0.0.40
codegen_flags: <defaults>
</compile_context>

<pallas_src>
import math

import jax
import jax.numpy as jnp
from jax import lax
from jax.experimental import pallas as pl
from jax.experimental.pallas import tpu as pltpu

C_OUT = 6                 # conv1 output channels
K = 5                     # conv kernel size
POOL_HW = 12              # pooled spatial size: (28 - 5 + 1) // 2
S = POOL_HW * POOL_HW     # 144 pooled spatial positions (lane dim)
KPAD = 32                 # 25 conv taps padded to 32 sublanes per pool phase
NPAD = 128                # padded feature width for the MLP


# ---------------------------------------------------------------------------
# Fused kernel: conv1 + bias + ReLU + 2x2 max-pool + fc1/ReLU + fc2/ReLU + fc3
# One grid step = one batch element.
# ---------------------------------------------------------------------------
def net_fused_kernel(pat_ref, wc_ref, bc_ref, w1_ref, b1_ref,
                     w2_ref, b2_ref, w3_ref, b3_ref, o_ref):
    # conv1 for all 6 channels x 4 pool phases as ONE MXU matmul.
    pat = pat_ref[0]                                     # (128, 144)
    conv = jnp.dot(wc_ref[...], pat,                     # (32, 144): row p*8+c
                   preferred_element_type=jnp.float32)
    # 2x2 max-pool == elementwise max over the 4 phase row-groups (sublane slices).
    pooled = jnp.maximum(jnp.maximum(conv[0:8], conv[8:16]),
                         jnp.maximum(conv[16:24], conv[24:32]))        # (8, 144)
    pooled = jnp.maximum(pooled + bc_ref[...], 0.0)                    # bias + ReLU

    # fc1 (864 -> 120, padded to 128): sum of 6 per-channel (1,144)@(144,128) matmuls.
    h = b1_ref[...]                                                    # (1, 128)
    for c in range(C_OUT):
        h = h + jnp.dot(pooled[c:c + 1, :], w1_ref[c],
                        preferred_element_type=jnp.float32)
    h = jnp.maximum(h, 0.0)

    # fc2 (120 -> 84) and fc3 (84 -> 10), both padded to 128-wide MXU matmuls.
    h = jnp.maximum(jnp.dot(h, w2_ref[...], preferred_element_type=jnp.float32)
                    + b2_ref[...], 0.0)
    h = jnp.dot(h, w3_ref[...], preferred_element_type=jnp.float32) + b3_ref[...]

    # Lane-dense, unmasked (8,128) store; wrapper slices [:, 0, :10].
    o_ref[0] = jnp.broadcast_to(h, (8, NPAD))


# ---------------------------------------------------------------------------
# Glue: wrapper-side im2col (layout plumbing only; input is tiny).
# ---------------------------------------------------------------------------
def _im2col_phases(x):
    """(B, 1, 28, 28) -> (B, 128, 144) lane-dense patch matrix.

    Row p*32 + (kh*5+kw)  (p = pool phase a*2+b)  holds the shifted window
    x[b, 0, 2i+a+kh, 2j+b+kw] flattened over the 144 pooled positions s = i*12+j.
    """
    B = x.shape[0]
    x2 = x[:, 0].astype(jnp.float32)                     # (B, 28, 28)
    phase_blocks = []
    for a in range(2):
        for b in range(2):
            taps = [
                x2[:, a + kh: a + kh + 2 * POOL_HW - 1: 2,
                      b + kw: b + kw + 2 * POOL_HW - 1: 2].reshape(B, 1, S)
                for kh in range(K) for kw in range(K)
            ]
            blk = jnp.concatenate(taps, axis=1)          # (B, 25, 144)
            blk = jnp.pad(blk, ((0, 0), (0, KPAD - K * K), (0, 0)))   # (B, 32, 144)
            phase_blocks.append(blk)
    return jnp.concatenate(phase_blocks, axis=1)         # (B, 128, 144)


def prepare_params(p):
    """One-time (outside jit) repack of PyTorch-layout weights for the kernel."""
    f32 = jnp.float32
    wflat = p["w_conv"].astype(f32).reshape(C_OUT, K * K)             # (6, 25), OIHW flat
    wc = jnp.zeros((32, 128), f32)
    for ph in range(4):                                               # block-diag replicate per phase
        wc = wc.at[ph * 8: ph * 8 + C_OUT, ph * KPAD: ph * KPAD + K * K].set(wflat)
    bc = jnp.zeros((8, S), f32).at[:C_OUT, :].set(
        jnp.broadcast_to(p["b_conv"].astype(f32)[:, None], (C_OUT, S)))
    # fc1: torch flatten order is feature = c*144 + (i*12 + j)
    w1csj = jnp.transpose(p["w1"].astype(f32).reshape(120, C_OUT, S), (1, 2, 0))  # (6,144,120)
    w1 = jnp.zeros((C_OUT, S, NPAD), f32).at[:, :, :120].set(w1csj)
    b1 = jnp.zeros((1, NPAD), f32).at[0, :120].set(p["b1"].astype(f32))
    w2 = jnp.zeros((NPAD, NPAD), f32).at[:120, :84].set(p["w2"].astype(f32).T)
    b2 = jnp.zeros((1, NPAD), f32).at[0, :84].set(p["b2"].astype(f32))
    w3 = jnp.zeros((NPAD, NPAD), f32).at[:84, :10].set(p["w3"].astype(f32).T)
    b3 = jnp.zeros((1, NPAD), f32).at[0, :10].set(p["b3"].astype(f32))
    return dict(wc=wc, bc=bc, w1=w1, b1=b1, w2=w2, b2=b2, w3=w3, b3=b3)


@jax.jit
def net_forward(x, pp):
    B = x.shape[0]
    pat = _im2col_phases(x)                              # (B, 128, 144)
    out = pl.pallas_call(
        net_fused_kernel,
        grid=(B,),
        out_shape=jax.ShapeDtypeStruct((B, 8, NPAD), jnp.float32),
        in_specs=[
            pl.BlockSpec((1, 4 * KPAD, S), lambda i: (i, 0, 0)),      # patches (per batch element)
            pl.BlockSpec((32, 128), lambda i: (0, 0)),                # conv weights (resident)
            pl.BlockSpec((8, S), lambda i: (0, 0)),                   # conv bias
            pl.BlockSpec((C_OUT, S, NPAD), lambda i: (0, 0, 0)),      # fc1 weights
            pl.BlockSpec((1, NPAD), lambda i: (0, 0)),                # fc1 bias
            pl.BlockSpec((NPAD, NPAD), lambda i: (0, 0)),             # fc2 weights
            pl.BlockSpec((1, NPAD), lambda i: (0, 0)),                # fc2 bias
            pl.BlockSpec((NPAD, NPAD), lambda i: (0, 0)),             # fc3 weights
            pl.BlockSpec((1, NPAD), lambda i: (0, 0)),                # fc3 bias
        ],
        out_specs=pl.BlockSpec((1, 8, NPAD), lambda i: (i, 0, 0)),
        compiler_params=pltpu.CompilerParams(
            dimension_semantics=("parallel",)),          # v7x: batch split across 2 TCs
    )(pat, pp["wc"], pp["bc"], pp["w1"], pp["b1"],
      pp["w2"], pp["b2"], pp["w3"], pp["b3"])
    return out[:, 0, :10]                                # (B, 10)


# ---------------------------------------------------------------------------
# Pure-JAX reference (correctness check only)
# ---------------------------------------------------------------------------
def reference_forward(x, p):
    conv = lax.conv_general_dilated(
        x, p["w_conv"], window_strides=(1, 1), padding="VALID",
        dimension_numbers=("NCHW", "OIHW", "NCHW"))
    conv = jnp.maximum(conv + p["b_conv"].reshape(1, C_OUT, 1, 1), 0.0)
    pooled = lax.reduce_window(conv, -jnp.inf, lax.max,
                               (1, 1, 2, 2), (1, 1, 2, 2), "VALID")
    h = pooled.reshape(x.shape[0], -1)
    h = jnp.maximum(h @ p["w1"].T + p["b1"], 0.0)
    h = jnp.maximum(h @ p["w2"].T + p["b2"], 0.0)
    return h @ p["w3"].T + p["b3"]


if __name__ == "__main__":
    key = jax.random.PRNGKey(0)
    ks = jax.random.split(key, 9)

    def uinit(k, shape, fan_in):
        bound = 1.0 / math.sqrt(fan_in)
        return jax.random.uniform(k, shape, jnp.float32, -bound, bound)

    params = {
        "w_conv": uinit(ks[0], (6, 1, 5, 5), 25),
        "b_conv": uinit(ks[1], (6,), 25),
        "w1": uinit(ks[2], (120, 864), 864),
        "b1": uinit(ks[3], (120,), 864),
        "w2": uinit(ks[4], (84, 120), 120),
        "b2": uinit(ks[5], (84,), 120),
        "w3": uinit(ks[6], (10, 84), 84),
        "b3": uinit(ks[7], (10,), 84),
    }
    # Spatial 28x28 is forced by fc1 expecting 864 = 6*12*12 features; batch = 2.
    x = jax.random.normal(ks[8], (2, 1, 28, 28), jnp.float32)

    pp = prepare_params(params)                # one-time weight repack, outside jit
    out = jax.block_until_ready(net_forward(x, pp))
    assert out.shape == (2, 10) and out.dtype == jnp.float32

    ref = reference_forward(x, params)
    err = float(jnp.max(jnp.abs(out - ref)))
    if not jnp.allclose(out, ref, atol=2e-2, rtol=2e-2):
        raise AssertionError(f"Pallas output mismatch vs reference, max abs err = {err}")

    print("KERNEL_OK")
</pallas_src>

<mosaic_0001>
module attributes {stable_mosaic.version = 11 : i64} {
  func.func @net_fused_kernel(%arg0: i32, %arg1: memref<1x128x144xf32, #tpu.memory_space<vmem>>, %arg2: memref<32x128xf32, #tpu.memory_space<vmem>>, %arg3: memref<8x144xf32, #tpu.memory_space<vmem>>, %arg4: memref<6x144x128xf32, #tpu.memory_space<vmem>>, %arg5: memref<1x128xf32, #tpu.memory_space<vmem>>, %arg6: memref<128x128xf32, #tpu.memory_space<vmem>>, %arg7: memref<1x128xf32, #tpu.memory_space<vmem>>, %arg8: memref<128x128xf32, #tpu.memory_space<vmem>>, %arg9: memref<1x128xf32, #tpu.memory_space<vmem>>, %arg10: memref<1x8x128xf32, #tpu.memory_space<vmem>>) attributes {dimension_semantics = [#tpu.dimension_semantics<parallel>], iteration_bounds = array<i64: 2>, scalar_prefetch = 0 : i64, scratch_operands = 0 : i64, tpu.core_type = #tpu.core_type<tc>, window_params = [{transform_indices = @transform_0, window_bounds = array<i64: 1, 128, 144>}, {pipeline_mode = #tpu.pipeline_mode<synchronous>, transform_indices = @transform_1, window_bounds = array<i64: 32, 128>}, {pipeline_mode = #tpu.pipeline_mode<synchronous>, transform_indices = @transform_2, window_bounds = array<i64: 8, 144>}, {pipeline_mode = #tpu.pipeline_mode<synchronous>, transform_indices = @transform_3, window_bounds = array<i64: 6, 144, 128>}, {pipeline_mode = #tpu.pipeline_mode<synchronous>, transform_indices = @transform_4, window_bounds = array<i64: 1, 128>}, {pipeline_mode = #tpu.pipeline_mode<synchronous>, transform_indices = @transform_5, window_bounds = array<i64: 128, 128>}, {pipeline_mode = #tpu.pipeline_mode<synchronous>, transform_indices = @transform_6, window_bounds = array<i64: 1, 128>}, {pipeline_mode = #tpu.pipeline_mode<synchronous>, transform_indices = @transform_7, window_bounds = array<i64: 128, 128>}, {pipeline_mode = #tpu.pipeline_mode<synchronous>, transform_indices = @transform_8, window_bounds = array<i64: 1, 128>}, {transform_indices = @transform_9, window_bounds = array<i64: 1, 8, 128>}]} {
    %c0 = arith.constant 0 : index
    %c0_0 = arith.constant 0 : index
    %c0_1 = arith.constant 0 : index
    %0 = vector.load %arg1[%c0, %c0_0, %c0_1] : memref<1x128x144xf32, #tpu.memory_space<vmem>>, vector<1x128x144xf32>
    %1 = vector.shape_cast %0 : vector<1x128x144xf32> to vector<128x144xf32>
    %c0_2 = arith.constant 0 : index
    %c0_3 = arith.constant 0 : index
    %2 = vector.load %arg2[%c0_2, %c0_3] : memref<32x128xf32, #tpu.memory_space<vmem>>, vector<32x128xf32>
    %cst = arith.constant dense<0.000000e+00> : vector<32x144xf32>
    %3 = tpu.matmul %2, %1, %cst {dimension_numbers = #tpu.dot_dimension_numbers<[1], [0], [0], [1], [0, 0, 1, 1], [], []>} : vector<32x128xf32>, vector<128x144xf32>, vector<32x144xf32> -> vector<32x144xf32>
    %4 = vector.extract_strided_slice %3 {offsets = [0, 0], sizes = [8, 144], strides = [1, 1]} : vector<32x144xf32> to vector<8x144xf32>
    %5 = vector.extract_strided_slice %3 {offsets = [8, 0], sizes = [8, 144], strides = [1, 1]} : vector<32x144xf32> to vector<8x144xf32>
    %6 = arith.maximumf %4, %5 : vector<8x144xf32>
    %7 = vector.extract_strided_slice %3 {offsets = [16, 0], sizes = [8, 144], strides = [1, 1]} : vector<32x144xf32> to vector<8x144xf32>
    %8 = vector.extract_strided_slice %3 {offsets = [24, 0], sizes = [8, 144], strides = [1, 1]} : vector<32x144xf32> to vector<8x144xf32>
    %9 = arith.maximumf %7, %8 : vector<8x144xf32>
    %10 = arith.maximumf %6, %9 : vector<8x144xf32>
    %c0_4 = arith.constant 0 : index
    %c0_5 = arith.constant 0 : index
    %11 = vector.load %arg3[%c0_4, %c0_5] : memref<8x144xf32, #tpu.memory_space<vmem>>, vector<8x144xf32>
    %12 = arith.addf %10, %11 : vector<8x144xf32>
    %cst_6 = arith.constant 0.000000e+00 : f32
    %13 = vector.broadcast %cst_6 : f32 to vector<8x144xf32>
    %14 = arith.maximumf %12, %13 : vector<8x144xf32>
    %c0_7 = arith.constant 0 : index
    %c0_8 = arith.constant 0 : index
    %15 = vector.load %arg5[%c0_7, %c0_8] : memref<1x128xf32, #tpu.memory_space<vmem>>, vector<1x128xf32>
    %16 = vector.extract_strided_slice %14 {offsets = [0, 0], sizes = [1, 144], strides = [1, 1]} : vector<8x144xf32> to vector<1x144xf32>
    %c0_9 = arith.constant 0 : index
    %c0_10 = arith.constant 0 : index
    %c0_11 = arith.constant 0 : index
    %17 = vector.load %arg4[%c0_9, %c0_10, %c0_11] : memref<6x144x128xf32, #tpu.memory_space<vmem>>, vector<1x144x128xf32>
    %18 = vector.shape_cast %17 : vector<1x144x128xf32> to vector<144x128xf32>
    %cst_12 = arith.constant dense<0.000000e+00> : vector<1x128xf32>
    %19 = tpu.matmul %16, %18, %cst_12 {dimension_numbers = #tpu.dot_dimension_numbers<[1], [0], [0], [1], [0, 0, 1, 1], [], []>} : vector<1x144xf32>, vector<144x128xf32>, vector<1x128xf32> -> vector<1x128xf32>
    %20 = arith.addf %15, %19 : vector<1x128xf32>
    %21 = vector.extract_strided_slice %14 {offsets = [1, 0], sizes = [1, 144], strides = [1, 1]} : vector<8x144xf32> to vector<1x144xf32>
    %c1 = arith.constant 1 : index
    %c0_13 = arith.constant 0 : index
    %c0_14 = arith.constant 0 : index
    %22 = vector.load %arg4[%c1, %c0_13, %c0_14] : memref<6x144x128xf32, #tpu.memory_space<vmem>>, vector<1x144x128xf32>
    %23 = vector.shape_cast %22 : vector<1x144x128xf32> to vector<144x128xf32>
    %cst_15 = arith.constant dense<0.000000e+00> : vector<1x128xf32>
    %24 = tpu.matmul %21, %23, %cst_15 {dimension_numbers = #tpu.dot_dimension_numbers<[1], [0], [0], [1], [0, 0, 1, 1], [], []>} : vector<1x144xf32>, vector<144x128xf32>, vector<1x128xf32> -> vector<1x128xf32>
    %25 = arith.addf %20, %24 : vector<1x128xf32>
    %26 = vector.extract_strided_slice %14 {offsets = [2, 0], sizes = [1, 144], strides = [1, 1]} : vector<8x144xf32> to vector<1x144xf32>
    %c2 = arith.constant 2 : index
    %c0_16 = arith.constant 0 : index
    %c0_17 = arith.constant 0 : index
    %27 = vector.load %arg4[%c2, %c0_16, %c0_17] : memref<6x144x128xf32, #tpu.memory_space<vmem>>, vector<1x144x128xf32>
    %28 = vector.shape_cast %27 : vector<1x144x128xf32> to vector<144x128xf32>
    %cst_18 = arith.constant dense<0.000000e+00> : vector<1x128xf32>
    %29 = tpu.matmul %26, %28, %cst_18 {dimension_numbers = #tpu.dot_dimension_numbers<[1], [0], [0], [1], [0, 0, 1, 1], [], []>} : vector<1x144xf32>, vector<144x128xf32>, vector<1x128xf32> -> vector<1x128xf32>
    %30 = arith.addf %25, %29 : vector<1x128xf32>
    %31 = vector.extract_strided_slice %14 {offsets = [3, 0], sizes = [1, 144], strides = [1, 1]} : vector<8x144xf32> to vector<1x144xf32>
    %c3 = arith.constant 3 : index
    %c0_19 = arith.constant 0 : index
    %c0_20 = arith.constant 0 : index
    %32 = vector.load %arg4[%c3, %c0_19, %c0_20] : memref<6x144x128xf32, #tpu.memory_space<vmem>>, vector<1x144x128xf32>
    %33 = vector.shape_cast %32 : vector<1x144x128xf32> to vector<144x128xf32>
    %cst_21 = arith.constant dense<0.000000e+00> : vector<1x128xf32>
    %34 = tpu.matmul %31, %33, %cst_21 {dimension_numbers = #tpu.dot_dimension_numbers<[1], [0], [0], [1], [0, 0, 1, 1], [], []>} : vector<1x144xf32>, vector<144x128xf32>, vector<1x128xf32> -> vector<1x128xf32>
    %35 = arith.addf %30, %34 : vector<1x128xf32>
    %36 = vector.extract_strided_slice %14 {offsets = [4, 0], sizes = [1, 144], strides = [1, 1]} : vector<8x144xf32> to vector<1x144xf32>
    %c4 = arith.constant 4 : index
    %c0_22 = arith.constant 0 : index
    %c0_23 = arith.constant 0 : index
    %37 = vector.load %arg4[%c4, %c0_22, %c0_23] : memref<6x144x128xf32, #tpu.memory_space<vmem>>, vector<1x144x128xf32>
    %38 = vector.shape_cast %37 : vector<1x144x128xf32> to vector<144x128xf32>
    %cst_24 = arith.constant dense<0.000000e+00> : vector<1x128xf32>
    %39 = tpu.matmul %36, %38, %cst_24 {dimension_numbers = #tpu.dot_dimension_numbers<[1], [0], [0], [1], [0, 0, 1, 1], [], []>} : vector<1x144xf32>, vector<144x128xf32>, vector<1x128xf32> -> vector<1x128xf32>
    %40 = arith.addf %35, %39 : vector<1x128xf32>
    %41 = vector.extract_strided_slice %14 {offsets = [5, 0], sizes = [1, 144], strides = [1, 1]} : vector<8x144xf32> to vector<1x144xf32>
    %c5 = arith.constant 5 : index
    %c0_25 = arith.constant 0 : index
    %c0_26 = arith.constant 0 : index
    %42 = vector.load %arg4[%c5, %c0_25, %c0_26] : memref<6x144x128xf32, #tpu.memory_space<vmem>>, vector<1x144x128xf32>
    %43 = vector.shape_cast %42 : vector<1x144x128xf32> to vector<144x128xf32>
    %cst_27 = arith.constant dense<0.000000e+00> : vector<1x128xf32>
    %44 = tpu.matmul %41, %43, %cst_27 {dimension_numbers = #tpu.dot_dimension_numbers<[1], [0], [0], [1], [0, 0, 1, 1], [], []>} : vector<1x144xf32>, vector<144x128xf32>, vector<1x128xf32> -> vector<1x128xf32>
    %45 = arith.addf %40, %44 : vector<1x128xf32>
    %cst_28 = arith.constant 0.000000e+00 : f32
    %46 = vector.broadcast %cst_28 : f32 to vector<1x128xf32>
    %47 = arith.maximumf %45, %46 : vector<1x128xf32>
    %c0_29 = arith.constant 0 : index
    %c0_30 = arith.constant 0 : index
    %48 = vector.load %arg6[%c0_29, %c0_30] : memref<128x128xf32, #tpu.memory_space<vmem>>, vector<128x128xf32>
    %cst_31 = arith.constant dense<0.000000e+00> : vector<1x128xf32>
    %49 = tpu.matmul %47, %48, %cst_31 {dimension_numbers = #tpu.dot_dimension_numbers<[1], [0], [0], [1], [0, 0, 1, 1], [], []>} : vector<1x128xf32>, vector<128x128xf32>, vector<1x128xf32> -> vector<1x128xf32>
    %c0_32 = arith.constant 0 : index
    %c0_33 = arith.constant 0 : index
    %50 = vector.load %arg7[%c0_32, %c0_33] : memref<1x128xf32, #tpu.memory_space<vmem>>, vector<1x128xf32>
    %51 = arith.addf %49, %50 : vector<1x128xf32>
    %cst_34 = arith.constant 0.000000e+00 : f32
    %52 = vector.broadcast %cst_34 : f32 to vector<1x128xf32>
    %53 = arith.maximumf %51, %52 : vector<1x128xf32>
    %c0_35 = arith.constant 0 : index
    %c0_36 = arith.constant 0 : index
    %54 = vector.load %arg8[%c0_35, %c0_36] : memref<128x128xf32, #tpu.memory_space<vmem>>, vector<128x128xf32>
    %cst_37 = arith.constant dense<0.000000e+00> : vector<1x128xf32>
    %55 = tpu.matmul %53, %54, %cst_37 {dimension_numbers = #tpu.dot_dimension_numbers<[1], [0], [0], [1], [0, 0, 1, 1], [], []>} : vector<1x128xf32>, vector<128x128xf32>, vector<1x128xf32> -> vector<1x128xf32>
    %c0_38 = arith.constant 0 : index
    %c0_39 = arith.constant 0 : index
    %56 = vector.load %arg9[%c0_38, %c0_39] : memref<1x128xf32, #tpu.memory_space<vmem>>, vector<1x128xf32>
    %57 = arith.addf %55, %56 : vector<1x128xf32>
    %58 = vector.shape_cast %57 : vector<1x128xf32> to vector<1x128xf32>
    %59 = vector.broadcast %58 : vector<1x128xf32> to vector<8x128xf32>
    %c0_40 = arith.constant 0 : index
    %c0_41 = arith.constant 0 : index
    %c0_42 = arith.constant 0 : index
    %60 = vector.load %arg10[%c0_40, %c0_41, %c0_42] : memref<1x8x128xf32, #tpu.memory_space<vmem>>, vector<1x8x128xf32>
    %61 = vector.shape_cast %60 : vector<1x8x128xf32> to vector<8x128xf32>
    %62 = vector.shape_cast %59 : vector<8x128xf32> to vector<1x8x128xf32>
    tpu.vector_store %arg10[%c0_40, %c0_41, %c0_42], %62 {strides = array<i32>} : memref<1x8x128xf32, #tpu.memory_space<vmem>>, vector<1x8x128xf32>,
    return
  }
  func.func @transform_0(%arg0: i32) -> (i32, i32, i32) {
    %c0_i32 = arith.constant 0 : i32
    %c0_i32_0 = arith.constant 0 : i32
    %c0_i32_1 = arith.constant 0 : i32
    return %arg0, %c0_i32, %c0_i32_0 : i32, i32, i32
  }
  func.func @transform_1(%arg0: i32) -> (i32, i32) {
    %c0_i32 = arith.constant 0 : i32
    %c0_i32_0 = arith.constant 0 : i32
    %c0_i32_1 = arith.constant 0 : i32
    return %c0_i32, %c0_i32_0 : i32, i32
  }
  func.func @transform_2(%arg0: i32) -> (i32, i32) {
    %c0_i32 = arith.constant 0 : i32
    %c0_i32_0 = arith.constant 0 : i32
    %c0_i32_1 = arith.constant 0 : i32
    return %c0_i32, %c0_i32_0 : i32, i32
  }
  func.func @transform_3(%arg0: i32) -> (i32, i32, i32) {
    %c0_i32 = arith.constant 0 : i32
    %c0_i32_0 = arith.constant 0 : i32
    %c0_i32_1 = arith.constant 0 : i32
    %c0_i32_2 = arith.constant 0 : i32
    return %c0_i32, %c0_i32_0, %c0_i32_1 : i32, i32, i32
  }
  func.func @transform_4(%arg0: i32) -> (i32, i32) {
    %c0_i32 = arith.constant 0 : i32
    %c0_i32_0 = arith.constant 0 : i32
    %c0_i32_1 = arith.constant 0 : i32
    return %c0_i32, %c0_i32_0 : i32, i32
  }
  func.func @transform_5(%arg0: i32) -> (i32, i32) {
    %c0_i32 = arith.constant 0 : i32
    %c0_i32_0 = arith.constant 0 : i32
    %c0_i32_1 = arith.constant 0 : i32
    return %c0_i32, %c0_i32_0 : i32, i32
  }
  func.func @transform_6(%arg0: i32) -> (i32, i32) {
    %c0_i32 = arith.constant 0 : i32
    %c0_i32_0 = arith.constant 0 : i32
    %c0_i32_1 = arith.constant 0 : i32
    return %c0_i32, %c0_i32_0 : i32, i32
  }
  func.func @transform_7(%arg0: i32) -> (i32, i32) {
    %c0_i32 = arith.constant 0 : i32
    %c0_i32_0 = arith.constant 0 : i32
    %c0_i32_1 = arith.constant 0 : i32
    return %c0_i32, %c0_i32_0 : i32, i32
  }
  func.func @transform_8(%arg0: i32) -> (i32, i32) {
    %c0_i32 = arith.constant 0 : i32
    %c0_i32_0 = arith.constant 0 : i32
    %c0_i32_1 = arith.constant 0 : i32
    return %c0_i32, %c0_i32_0 : i32, i32
  }
  func.func @transform_9(%arg0: i32) -> (i32, i32, i32) {
    %c0_i32 = arith.constant 0 : i32
    %c0_i32_0 = arith.constant 0 : i32
    %c0_i32_1 = arith.constant 0 : i32
    return %arg0, %c0_i32, %c0_i32_0 : i32, i32, i32
  }
}

</mosaic_0001>

<bundles_post_ra>
// kernel: net_forward.1
= control target key start
LH: loop header
LB: loop body
LE: loop exit
PB: predicated region body
PF: predicated region fallthrough
CT: control target
= control target key end

     0   :  { %s1807_s30 = smov 0   ;;  %s2409_s0 = inlined_call_operand.vmem [shape: f32[2,128,144], index: 0, kind: input, shape index: {}]   ;;  %s2410_s1 = inlined_call_operand.vmem [shape: f32[32,128], index: 1, kind: input, shape index: {}]   ;;  %s2411_s2 = inlined_call_operand.vmem [shape: f32[8,144], index: 2, kind: input, shape index: {}]   ;;  %s2412_s3 = inlined_call_operand.vmem [shape: f32[6,144,128], index: 3, kind: input, shape index: {}]   ;;  %s2413_s4 = inlined_call_operand.vmem [shape: f32[1,128], index: 4, kind: input, shape index: {}]   ;;  %s2414_s5 = inlined_call_operand.vmem [shape: f32[128,128], index: 5, kind: input, shape index: {}]   ;;  %s2415_s6 = inlined_call_operand.vmem [shape: f32[1,128], index: 6, kind: input, shape index: {}]   ;;  %s2416_s7 = inlined_call_operand.vmem [shape: f32[128,128], index: 7, kind: input, shape index: {}]   ;;  %s2417_s8 = inlined_call_operand.vmem [shape: f32[1,128], index: 8, kind: input, shape index: {}]   ;;  %s2418_s9 = inlined_call_operand.vmem [shape: f32[2,8,128], index: 9, kind: output, shape index: {}]  }
   0x1 LB: > { %s1272_s10 = sadd.s32 4294967295, %s1752_s30   ;;  %p1276_p0 = scmp.ge.s32.totalorder %s1752_s30, 1  ;;  %s1752_s30 = sphi %s1807_s30, %s19_s30  }
   0x2   : > { %p287_p1 = scmp.lt.s32.totalorder %s1752_s30, 3 }
   0x4   : > { %p288_p2 = pnand %p1276_p0, %p287_p1 }
   0x5   : > { %p322_p3 = scmp.lt.s32.totalorder (!%p288_p2), %s1272_s10, 1  ;;  %v1754_v0 = vmov (!%p288_p2), 0.0   ;;  %v1755_v1 = vmov (!%p288_p2), 0.0|0.0   ;;  %v1300_v2 = vld [vmem:[%s2412_s3 + $0x120] sm:$0xff] (!%p288_p2)  ;;  %v1301_v3 = vld [vmem:[%s2412_s3 + $0x128] sm:$0xff] (!%p288_p2)  ;;  %v1302_v5 = vld [vmem:[%s2412_s3 + $0x130] sm:$0xff] (!%p288_p2) }
   0x6   : > { %291 = sbr.rel (%p288_p2) target bundleno = 1045 (0x415), region = 56  ;;  %431 = vmatprep.mubr.f32.mxu0 (!%p288_p2), %v1754_v0  ;;  %1569 = vmatprep.subr.bf16.mxu1 (!%p288_p2), %v1755_v1  ;;  %v1570_v4 = vpack.c.bf16 (!%p288_p2), %v1301_v3, %v1300_v2  ;;  %v1303_v6 = vld [vmem:[%s2412_s3 + $0x138] sm:$0xff] (!%p288_p2)  ;;  %v1304_v8 = vld [vmem:[%s2412_s3 + $0x140] sm:$0xff] (!%p288_p2)  ;;  %v1305_v9 = vld [vmem:[%s2412_s3 + $0x148] sm:$0xff] (!%p288_p2)  ;;  %vm487_vm0 = vcmask (!%p288_p2), 130048   ;;  %vm1756_vm1 = vmmov (!%p288_p2), 0  }
   0x7   : > { %v1573_v7 = vpack.c.bf16 (!%p288_p2), %v1303_v6, %v1302_v5  ;;  %v1576_v23 = vpack.c.bf16 (!%p288_p2), %v1305_v9, %v1304_v8  ;;  %v469_v59 = vld [vmem:[%s2412_s3] sm:$0xff] (!%p288_p2)  ;;  %v470_v60 = vld [vmem:[%s2412_s3 + $0x8] sm:$0xff] (!%p288_p2)  ;;  %v471_v63 = vld [vmem:[%s2412_s3 + $0x10] sm:$0xff] (!%p288_p2) }
   0x8   : > { %1571 = vmatpush1.bf16.msra.mxu1 (!%p288_p2), %v1570_v4  ;;  %v363_v61 = vld [vmem:[%s2410_s1] sm:$0xff] (!%p288_p2)  ;;  %v1516_v62 = vpack.c.bf16 (!%p288_p2), %v470_v60, %v469_v59  ;;  %v472_v2 = vld [vmem:[%s2412_s3 + $0x18] sm:$0xff] (!%p288_p2)  ;;  %v364_v3 = vld [vmem:[%s2410_s1 + $0x8] sm:$0xff] (!%p288_p2) }
   0x9   : > { %1572 = vmatprep.subr.bf16.mxu1 (!%p288_p2), %v1755_v1  ;;  %v1519_v4 = vpack.c.bf16 (!%p288_p2), %v472_v2, %v471_v63  ;;  %v473_v5 = vld [vmem:[%s2412_s3 + $0x20] sm:$0xff] (!%p288_p2)  ;;  %v474_v6 = vld [vmem:[%s2412_s3 + $0x28] sm:$0xff] (!%p288_p2)  ;;  %v475_v9 = vld [vmem:[%s2412_s3 + $0x30] sm:$0xff] (!%p288_p2) }
   0xa   : > { %v1522_v8 = vpack.c.bf16 (!%p288_p2), %v474_v6, %v473_v5  ;;  %v463_v60 = vld [vmem:[%s2411_s2 + $0x8] sm:$0xff] (!%p288_p2)  ;;  %v1281_v63 = vld [vmem:[%s2412_s3 + $0x90] sm:$0xff] (!%p288_p2)  ;;  %v1282_v2 = vld [vmem:[%s2412_s3 + $0x98] sm:$0xff] (!%p288_p2) }
   0xb   : > { %v1543_v6 = vpack.c.bf16 (!%p288_p2), %v1282_v2, %v1281_v63  ;;  %v1339_v63 = vld [vmem:[%s2412_s3 + $0x248] sm:$0xff] (!%p288_p2) }
   0xc   : > { %1574 = vmatpush1.bf16.msra.mxu1 (!%p288_p2), %v1573_v7  ;;  %v365_v7 = vld [vmem:[%s2410_s1 + $0x10] sm:$0xff] (!%p288_p2) }
   0xd   : > { %s2420_s10 = smov (!%p322_p3, %s1272_s10), 1  ;;  %1575 = vmatprep.subr.bf16.mxu1 %v1755_v1 }
   0xe   : > { %s1378_s19 = sshll.u32 %s2420_s10, 8  ;;  %s1279_s28 = sshll.u32 %s2420_s10, 3 }
   0xf   : > { %s1835_s22 = scalar_lea.vmem %s2409_s0, %s1378_s19  ;;  %s330_s12 = scalar_lea.vmem %s2418_s9, %s1279_s28 }
  0x10   : > { %v332_v10 = vld [vmem:[%s1835_s22 + $0x8] sm:$0xff]  ;;  %v334_v11 = vld [vmem:[%s1835_s22 + $0x18] sm:$0xff]  ;;  %v331_v12 = vld [vmem:[%s1835_s22] sm:$0xff]  ;;  %1577 = vmatpush1.bf16.msra.mxu1 %v1576_v23 }
  0x11   : > { %v1483_v13 = vpack.c.bf16 %v334_v11, %v332_v10  ;;  %v333_v14 = vld [vmem:[%s1835_s22 + $0x10] sm:$0xff]  ;;  %v336_v15 = vld [vmem:[%s1835_s22 + $0x28] sm:$0xff]  ;;  %v338_v16 = vld [vmem:[%s1835_s22 + $0x38] sm:$0xff]  ;;  %1578 = vmatprep.subr.bf16.mxu1 %v1755_v1 }
  0x12   : > { %v1485_v17 = vpack.c.bf16 %v333_v14, %v331_v12  ;;  %v1487_v18 = vpack.c.bf16 %v338_v16, %v336_v15  ;;  %v335_v19 = vld [vmem:[%s1835_s22 + $0x20] sm:$0xff]  ;;  %v337_v20 = vld [vmem:[%s1835_s22 + $0x30] sm:$0xff]  ;;  %v340_v21 = vld [vmem:[%s1835_s22 + $0x48] sm:$0xff] }
  0x13   : > { %1484 = vmatprep.subr.bf16.mxu0 %v1483_v13  ;;  %v342_v22 = vld [vmem:[%s1835_s22 + $0x58] sm:$0xff]  ;;  %v1489_v24 = vpack.c.bf16 %v337_v20, %v335_v19  ;;  %v339_v26 = vld [vmem:[%s1835_s22 + $0x40] sm:$0xff]  ;;  %v341_v27 = vld [vmem:[%s1835_s22 + $0x50] sm:$0xff] }
  0x14   : > { %1486 = vmatpush1.bf16.msra.mxu0 %v1485_v17  ;;  %v1491_v25 = vpack.c.bf16 %v342_v22, %v340_v21  ;;  %v344_v28 = vld [vmem:[%s1835_s22 + $0x68] sm:$0xff]  ;;  %v346_v29 = vld [vmem:[%s1835_s22 + $0x78] sm:$0xff]  ;;  %v1493_v30 = vpack.c.bf16 %v341_v27, %v339_v26  ;;  %v343_v32 = vld [vmem:[%s1835_s22 + $0x60] sm:$0xff] }
  0x15   : > { %1488 = vmatprep.subr.bf16.mxu0 %v1487_v18  ;;  %v1495_v31 = vpack.c.bf16 %v346_v29, %v344_v28  ;;  %v345_v33 = vld [vmem:[%s1835_s22 + $0x70] sm:$0xff]  ;;  %v348_v34 = vld [vmem:[%s1835_s22 + $0x88] sm:$0xff]  ;;  %v350_v35 = vld [vmem:[%s1835_s22 + $0x98] sm:$0xff] }
  0x16   : > { %v1497_v36 = vpack.c.bf16 %v345_v33, %v343_v32  ;;  %v1499_v37 = vpack.c.bf16 %v350_v35, %v348_v34  ;;  %v347_v38 = vld [vmem:[%s1835_s22 + $0x80] sm:$0xff]  ;;  %v349_v39 = vld [vmem:[%s1835_s22 + $0x90] sm:$0xff]  ;;  %v352_v40 = vld [vmem:[%s1835_s22 + $0xa8] sm:$0xff] }
  0x17   : > { %v354_v41 = vld [vmem:[%s1835_s22 + $0xb8] sm:$0xff]  ;;  %v1501_v42 = vpack.c.bf16 %v349_v39, %v347_v38  ;;  %v351_v44 = vld [vmem:[%s1835_s22 + $0xa0] sm:$0xff]  ;;  %v353_v45 = vld [vmem:[%s1835_s22 + $0xb0] sm:$0xff] }
  0x18   : > { %1490 = vmatpush1.bf16.msra.mxu0 %v1489_v24  ;;  %v1503_v43 = vpack.c.bf16 %v354_v41, %v352_v40  ;;  %v356_v46 = vld [vmem:[%s1835_s22 + $0xc8] sm:$0xff]  ;;  %v358_v47 = vld [vmem:[%s1835_s22 + $0xd8] sm:$0xff]  ;;  %v1505_v48 = vpack.c.bf16 %v353_v45, %v351_v44  ;;  %v355_v50 = vld [vmem:[%s1835_s22 + $0xc0] sm:$0xff] }
  0x19   : > { %1492 = vmatprep.subr.bf16.mxu0 %v1491_v25  ;;  %v1507_v49 = vpack.c.bf16 %v358_v47, %v356_v46  ;;  %v357_v51 = vld [vmem:[%s1835_s22 + $0xd0] sm:$0xff]  ;;  %v360_v52 = vld [vmem:[%s1835_s22 + $0xe8] sm:$0xff]  ;;  %v362_v53 = vld [vmem:[%s1835_s22 + $0xf8] sm:$0xff] }
  0x1a   : > { %v1509_v54 = vpack.c.bf16 %v357_v51, %v355_v50  ;;  %v1511_v55 = vpack.c.bf16 %v362_v53, %v360_v52  ;;  %v359_v56 = vld [vmem:[%s1835_s22 + $0xe0] sm:$0xff]  ;;  %v361_v57 = vld [vmem:[%s1835_s22 + $0xf0] sm:$0xff]  ;;  %v476_v10 = vld [vmem:[%s2412_s3 + $0x38] sm:$0xff] }
  0x1b   : > { %v1513_v58 = vpack.c.bf16 %v361_v57, %v359_v56  ;;  %v366_v11 = vld [vmem:[%s2410_s1 + $0x18] sm:$0xff]  ;;  %v1525_v12 = vpack.c.bf16 %v476_v10, %v475_v9  ;;  %v1306_v13 = vld [vmem:[%s2412_s3 + $0x150] sm:$0xff]  ;;  %v477_v16 = vld [vmem:[%s2412_s3 + $0x40] sm:$0xff] }
  0x1c   : > { %1494 = vmatpush1.bf16.msra.mxu0 %v1493_v30  ;;  %v1307_v14 = vld [vmem:[%s2412_s3 + $0x158] sm:$0xff]  ;;  %v478_v17 = vld [vmem:[%s2412_s3 + $0x48] sm:$0xff]  ;;  %v1308_v19 = vld [vmem:[%s2412_s3 + $0x160] sm:$0xff] }
  0x1d   : > { %1496 = vmatprep.subr.bf16.mxu0 %v1495_v31  ;;  %v1579_v15 = vpack.c.bf16 %v1307_v14, %v1306_v13  ;;  %v1528_v18 = vpack.c.bf16 %v478_v17, %v477_v16  ;;  %v1309_v20 = vld [vmem:[%s2412_s3 + $0x168] sm:$0xff]  ;;  %v479_v22 = vld [vmem:[%s2412_s3 + $0x50] sm:$0xff]  ;;  %v480_v23 = vld [vmem:[%s2412_s3 + $0x58] sm:$0xff] }
  0x1e   : > { %v1582_v21 = vpack.c.bf16 %v1309_v20, %v1308_v19  ;;  %v1531_v24 = vpack.c.bf16 %v480_v23, %v479_v22  ;;  %v1310_v25 = vld [vmem:[%s2412_s3 + $0x170] sm:$0xff]  ;;  %v1311_v26 = vld [vmem:[%s2412_s3 + $0x178] sm:$0xff]  ;;  %v481_v28 = vld [vmem:[%s2412_s3 + $0x60] sm:$0xff] }
  0x1f   : > { %1580 = vmatpush1.bf16.msra.mxu1 %v1579_v15  ;;  %v1585_v27 = vpack.c.bf16 %v1311_v26, %v1310_v25  ;;  %v482_v29 = vld [vmem:[%s2412_s3 + $0x68] sm:$0xff]  ;;  %v1312_v31 = vld [vmem:[%s2412_s3 + $0x180] sm:$0xff]  ;;  %v483_v34 = vld [vmem:[%s2412_s3 + $0x70] sm:$0xff] }
  0x20   : > { %1498 = vmatpush1.bf16.msra.mxu0 %v1497_v36  ;;  %1581 = vmatprep.subr.bf16.mxu1 %v1755_v1  ;;  %v1534_v30 = vpack.c.bf16 %v482_v29, %v481_v28  ;;  %v1313_v32 = vld [vmem:[%s2412_s3 + $0x188] sm:$0xff]  ;;  %v484_v35 = vld [vmem:[%s2412_s3 + $0x78] sm:$0xff]  ;;  %v485_v40 = vld [vmem:[%s2412_s3 + $0x80] sm:$0xff] }
  0x21   : > { %1500 = vmatprep.subr.bf16.mxu0 %v1499_v37  ;;  %v1588_v33 = vpack.c.bf16 %v1313_v32, %v1312_v31  ;;  %v1537_v36 = vpack.c.bf16 %v484_v35, %v483_v34  ;;  %v1314_v37 = vld [vmem:[%s2412_s3 + $0x190] sm:$0xff]  ;;  %v1315_v38 = vld [vmem:[%s2412_s3 + $0x198] sm:$0xff]  ;;  %v486_v41 = vld [vmem:[%s2412_s3 + $0x88] sm:$0xff] }
  0x22   : > { %v1591_v39 = vpack.c.bf16 %v1315_v38, %v1314_v37  ;;  %v1317_v44 = vld [vmem:[%s2412_s3 + $0x1a8] sm:$0xff]  ;;  %v462_v57 = vld [vmem:[%s2411_s2] sm:$0xff]  ;;  %v1285_v19 = vld [vmem:[%s2412_s3 + $0xb0] sm:$0xff] }
  0x23   : > { %1583 = vmatpush1.bf16.msra.mxu1 %v1582_v21  ;;  %v1283_v9 = vld [vmem:[%s2412_s3 + $0xa0] sm:$0xff]  ;;  %v1284_v10 = vld [vmem:[%s2412_s3 + $0xa8] sm:$0xff]  ;;  %v1286_v20 = vld [vmem:[%s2412_s3 + $0xb8] sm:$0xff] }
  0x24   : > { %1502 = vmatpush1.bf16.msra.mxu0 %v1501_v42  ;;  %1584 = vmatprep.subr.bf16.mxu1 %v1755_v1  ;;  %v1540_v42 = vpack.c.bf16 %v486_v41, %v485_v40  ;;  %v1546_v15 = vpack.c.bf16 %v1284_v10, %v1283_v9  ;;  %v1321_v16 = vld [vmem:[%s2412_s3 + $0x1c0] sm:$0xff]  ;;  %v1322_v17 = vld [vmem:[%s2412_s3 + $0x1c8] sm:$0xff]  ;;  %v1549_v22 = vpack.c.bf16 %v1286_v20, %v1285_v19  ;;  %v1323_v23 = vld [vmem:[%s2412_s3 + $0x1d0] sm:$0xff] }
  0x25   : > { %1504 = vmatprep.subr.bf16.mxu0 %v1503_v43  ;;  %v1316_v43 = vld [vmem:[%s2412_s3 + $0x1a0] sm:$0xff]  ;;  %v1600_v21 = vpack.c.bf16 %v1322_v17, %v1321_v16  ;;  %v1288_v26 = vld [vmem:[%s2412_s3 + $0xc8] sm:$0xff]  ;;  %v1289_v31 = vld [vmem:[%s2412_s3 + $0xd0] sm:$0xff] }
  0x26   : > { %v1594_v45 = vpack.c.bf16 %v1317_v44, %v1316_v43  ;;  %v1287_v25 = vld [vmem:[%s2412_s3 + $0xc0] sm:$0xff]  ;;  %v1290_v32 = vld [vmem:[%s2412_s3 + $0xd8] sm:$0xff]  ;;  %v1327_v35 = vld [vmem:[%s2412_s3 + $0x1f0] sm:$0xff] }
  0x27   : > { %1586 = vmatpush1.bf16.msra.mxu1 %v1585_v27  ;;  %v1552_v28 = vpack.c.bf16 %v1288_v26, %v1287_v25  ;;  %v1325_v29 = vld [vmem:[%s2412_s3 + $0x1e0] sm:$0xff]  ;;  %v1555_v34 = vpack.c.bf16 %v1290_v32, %v1289_v31  ;;  %v1292_v38 = vld [vmem:[%s2412_s3 + $0xe8] sm:$0xff]  ;;  %v1293_v43 = vld [vmem:[%s2412_s3 + $0xf0] sm:$0xff] }
  0x28   : > { %1506 = vmatpush1.bf16.msra.mxu0 %v1505_v48  ;;  %1587 = vmatprep.subr.bf16.mxu1 %v1755_v1  ;;  %v1291_v37 = vld [vmem:[%s2412_s3 + $0xe0] sm:$0xff]  ;;  %v1294_v44 = vld [vmem:[%s2412_s3 + $0xf8] sm:$0xff]  ;;  %v1348_v20 = vld [vmem:[%s2412_s3 + $0x290] sm:$0xff] }
  0x29   : > { %1508 = vmatprep.subr.bf16.mxu0 %v1507_v49  ;;  %v1558_v40 = vpack.c.bf16 %v1292_v38, %v1291_v37  ;;  %v1329_v41 = vld [vmem:[%s2412_s3 + $0x200] sm:$0xff]  ;;  %v1352_v26 = vld [vmem:[%s2412_s3 + $0x2b0] sm:$0xff]  ;;  %v1360_v37 = vld [vmem:[%s2412_s3 + $0x2e8] sm:$0xff] }
  0x2a   : > { %v1346_v17 = vld [vmem:[%s2412_s3 + $0x280] sm:$0xff]  ;;  %v1357_v32 = vld [vmem:[%s2412_s3 + $0x2d0] sm:$0xff] }
  0x2b   : > { %1589 = vmatpush1.bf16.msra.mxu1 %v1588_v33 }
  0x2c   : > { %1510 = vmatpush1.bf16.msra.mxu0 %v1509_v54  ;;  %1590 = vmatprep.subr.bf16.mxu1 %v1755_v1 }
  0x2d   : > { %1512 = vmatprep.subr.bf16.mxu0 %v1511_v55 }
  0x2f   : > { %1592 = vmatpush1.bf16.msra.mxu1 %v1591_v39 }
  0x30   : > { %1514 = vmatpush1.bf16.msra.mxu0 %v1513_v58  ;;  %1593 = vmatprep.subr.bf16.mxu1 %v1755_v1 }
  0x31   : > { %1515 = vmatprep.subr.bf16.mxu0 %v1755_v1 }
  0x33   : > { %432 = vmatmul.mubr.f32.vlgmr.msra.gmra.mrb[0].mxu0 %v363_v61  ;;  %1595 = vmatpush1.bf16.msra.mxu1 %v1594_v45 }
  0x34   : > { %437 = vmatprep.mubr.f32.mxu0 %v1754_v0  ;;  %1517 = vmatpush1.bf16.msra.mxu0 %v1516_v62 }
  0x35   : > { %1518 = vmatprep.subr.bf16.mxu0 %v1755_v1  ;;  %1596 = vmatprep.subr.bf16.mxu1 %v1755_v1 }
  0x37   : > { %438 = vmatmul.mubr.f32.gmra.mrb[2].mxu0 %v364_v3 }
  0x38   : > { %443 = vmatprep.mubr.f32.mxu0 %v1754_v0  ;;  %1520 = vmatpush1.bf16.msra.mxu0 %v1519_v4 }
  0x39   : > { %1521 = vmatprep.subr.bf16.mxu0 %v1755_v1 }
  0x3b   : > { %444 = vmatmul.mubr.f32.gmra.mrb[4].mxu0 %v365_v7  ;;  %v1319_v7 = vld [vmem:[%s2412_s3 + $0x1b0] sm:$0xff] }
  0x3c   : > { %449 = vmatprep.mubr.f32.mxu0 %v1754_v0  ;;  %1523 = vmatpush1.bf16.msra.mxu0 %v1522_v8  ;;  %v1320_v8 = vld [vmem:[%s2412_s3 + $0x1b8] sm:$0xff] }
  0x3d   : > { %1524 = vmatprep.subr.bf16.mxu0 %v1755_v1  ;;  %v1597_v13 = vpack.c.bf16 %v1320_v8, %v1319_v7  ;;  %v1340_v7 = vld [vmem:[%s2412_s3 + $0x250] sm:$0xff]  ;;  %v1341_v8 = vld [vmem:[%s2412_s3 + $0x258] sm:$0xff] }
  0x3e   : > { %v1627_v10 = vpack.c.bf16 %v1341_v8, %v1340_v7  ;;  %v1044_v7 = vld [vmem:[%s2414_s5 + $0x28] sm:$0xff] }
  0x3f   : > { %450 = vmatmul.mubr.f32.gmra.mrb[6].mxu0 %v366_v11 }
  0x40   : > { %1526 = vmatpush1.bf16.msra.mxu0 %v1525_v12 }
  0x41   : > { %1527 = vmatprep.subr.bf16.mxu0 %v1755_v1 }
  0x44   : > { %1529 = vmatpush1.bf16.msra.mxu0 %v1528_v18 }
  0x45   : > { %1530 = vmatprep.subr.bf16.mxu0 %v1755_v1 }
  0x48   : > { %1532 = vmatpush1.bf16.msra.mxu0 %v1531_v24  ;;  %v1324_v24 = vld [vmem:[%s2412_s3 + $0x1d8] sm:$0xff] }
  0x49   : > { %1533 = vmatprep.subr.bf16.mxu0 %v1755_v1  ;;  %v1603_v27 = vpack.c.bf16 %v1324_v24, %v1323_v23  ;;  %v1350_v23 = vld [vmem:[%s2412_s3 + $0x2a0] sm:$0xff]  ;;  %v1351_v24 = vld [vmem:[%s2412_s3 + $0x2a8] sm:$0xff] }
  0x4a   : > { %v1642_v25 = vpack.c.bf16 %v1351_v24, %v1350_v23 }
  0x4c   : > { %1535 = vmatpush1.bf16.msra.mxu0 %v1534_v30  ;;  %v1326_v30 = vld [vmem:[%s2412_s3 + $0x1e8] sm:$0xff] }
  0x4d   : > { %1536 = vmatprep.subr.bf16.mxu0 %v1755_v1  ;;  %v1606_v33 = vpack.c.bf16 %v1326_v30, %v1325_v29  ;;  %v1354_v29 = vld [vmem:[%s2412_s3 + $0x2c0] sm:$0xff]  ;;  %v1355_v30 = vld [vmem:[%s2412_s3 + $0x2c8] sm:$0xff] }
  0x4e   : > { %v1648_v31 = vpack.c.bf16 %v1355_v30, %v1354_v29  ;;  %v1128_v29 = vld [vmem:[%s2416_s7 + $0x8] sm:$0xff] }
  0x50   : > { %1538 = vmatpush1.bf16.msra.mxu0 %v1537_v36  ;;  %v1328_v36 = vld [vmem:[%s2412_s3 + $0x1f8] sm:$0xff] }
  0x51   : > { %1539 = vmatprep.subr.bf16.mxu0 %v1755_v1  ;;  %v1609_v39 = vpack.c.bf16 %v1328_v36, %v1327_v35  ;;  %v1359_v36 = vld [vmem:[%s2412_s3 + $0x2e0] sm:$0xff] }
  0x54   : > { %1541 = vmatpush1.bf16.msra.mxu0 %v1540_v42  ;;  %v1330_v42 = vld [vmem:[%s2412_s3 + $0x208] sm:$0xff] }
  0x55   : > { %1542 = vmatprep.subr.bf16.mxu0 %v1755_v1  ;;  %v1612_v45 = vpack.c.bf16 %v1330_v42, %v1329_v41  ;;  %v1362_v41 = vld [vmem:[%s2412_s3 + $0x2f8] sm:$0xff] }
 0x106   : > { %v433_v46 = vpop.f32.mrb[0].mxu0 }
 0x107   : > { %v435_v47 = vpop.f32.mrb[1].mxu0 }
 0x10a   : > { %v439_v48 = vpop.f32.mrb[2].mxu0 }
 0x10b   : > { %v456_v49 = vmax.f32 %v433_v46, %v439_v48  ;;  %v441_v50 = vpop.f32.mrb[3].mxu0  ;;  %v1561_v46 = vpack.c.bf16 %v1294_v44, %v1293_v43  ;;  %v1332_v48 = vld [vmem:[%s2412_s3 + $0x218] sm:$0xff]  ;;  %v1364_v43 = vld [vmem:[%s2412_s3 + $0x308] sm:$0xff] }
 0x10c   : > { %v457_v51 = vmax.f32 %v435_v47, %v441_v50  ;;  %v1331_v47 = vld [vmem:[%s2412_s3 + $0x210] sm:$0xff]  ;;  %v1296_v50 = vld [vmem:[%s2412_s3 + $0x108] sm:$0xff] }
 0x10e   : > { %v445_v52 = vpop.f32.mrb[4].mxu0 }
 0x10f   : > { %v447_v53 = vpop.f32.mrb[5].mxu0 }
 0x112   : > { %v451_v54 = vpop.f32.mrb[6].mxu0 }
 0x113   : > { %v458_v55 = vmax.f32 %v445_v52, %v451_v54  ;;  %v453_v56 = vpop.f32.mrb[7].mxu0  ;;  %v1334_v54 = vld [vmem:[%s2412_s3 + $0x228] sm:$0xff] }
 0x114   : > { %v459_v58 = vmax.f32 %v447_v53, %v453_v56  ;;  %v1333_v53 = vld [vmem:[%s2412_s3 + $0x220] sm:$0xff]  ;;  %v1298_v56 = vld [vmem:[%s2412_s3 + $0x118] sm:$0xff] }
 0x115   : > { %v460_v59 = vmax.f32 %v456_v49, %v458_v55  ;;  %v1295_v49 = vld [vmem:[%s2412_s3 + $0x100] sm:$0xff]  ;;  %v1297_v55 = vld [vmem:[%s2412_s3 + $0x110] sm:$0xff] }
 0x116   : > { %v461_v61 = vmax.f32 %v457_v51, %v459_v58  ;;  %v1615_v51 = vpack.c.bf16 %v1332_v48, %v1331_v47  ;;  %v1564_v52 = vpack.c.bf16 %v1296_v50, %v1295_v49  ;;  %v1567_v58 = vpack.c.bf16 %v1298_v56, %v1297_v55  ;;  %v1367_v48 = vld [vmem:[%s2412_s3 + $0x320] sm:$0xff]  ;;  %v1368_v49 = vld [vmem:[%s2412_s3 + $0x328] sm:$0xff] }
 0x117   : > { %v464_v62 = vadd.f32 %v462_v57, %v460_v59  ;;  %v1618_v57 = vpack.c.bf16 %v1334_v54, %v1333_v53  ;;  %v1335_v59 = vld [vmem:[%s2412_s3 + $0x230] sm:$0xff]  ;;  %v1666_v50 = vpack.c.bf16 %v1368_v49, %v1367_v48  ;;  %v1371_v54 = vld [vmem:[%s2412_s3 + $0x340] sm:$0xff]  ;;  %v1372_v55 = vld [vmem:[%s2412_s3 + $0x348] sm:$0xff] }
 0x118   : > { %v465_v3 = vadd.f32 %v463_v60, %v461_v61  ;;  %v1336_v60 = vld [vmem:[%s2412_s3 + $0x238] sm:$0xff]  ;;  %v1672_v56 = vpack.c.bf16 %v1372_v55, %v1371_v54  ;;  %v1139_v48 = vld [vmem:[%s2416_s7 + $0x60] sm:$0xff]  ;;  %v1140_v49 = vld [vmem:[%s2416_s7 + $0x68] sm:$0xff] }
 0x119   : > { %v2011_v4 = vmax.f32 %v464_v62, 0.0  ;;  %v1621_v61 = vpack.c.bf16 %v1336_v60, %v1335_v59  ;;  %v1338_v62 = vld [vmem:[%s2412_s3 + $0x240] sm:$0xff] }
 0x11a   : > { %v2013_v5 = vmax.f32 %v465_v3, 0.0  ;;  %v1624_v3 = vpack.c.bf16 %v1339_v63, %v1338_v62  ;;  %v1040_v62 = vld [vmem:[%s2414_s5 + $0x8] sm:$0xff]  ;;  %v1041_v63 = vld [vmem:[%s2414_s5 + $0x10] sm:$0xff]  ;;  %v1055_v54 = vld [vmem:[%s2415_s6] sm:$0x1] }
 0x11b   : > { %v677_v14 = vrot.slane %v2011_v4, 2  ;;  %v582_v2 = vrot.slane %v2011_v4, 1  ;;  %v867_v35 = vrot.slane %v2011_v4, 4  ;;  %v962_v60 = vrot.slane %v2011_v4, 5 }
 0x11c   : > { %1280 = vmatprep.mubr.msk.f32.mxu0 %vm487_vm0, %v2013_v5  ;;  %v583_v11 = vrot.slane %v2013_v5, 1  ;;  %v678_v12 = vrot.slane %v2013_v5, 2  ;;  %v773_v18 = vrot.slane %v2013_v5, 3  ;;  %v868_v9 = vrot.slane %v2013_v5, 4 }
 0x11d   : > { %556 = vmatmul.mubr.f32.vlgmr.msra.gmra.mrb[8].mxu0 %v2011_v4  ;;  %v963_v38 = vrot.slane %v2013_v5, 5  ;;  %v1363_v5 = vld [vmem:[%s2412_s3 + $0x300] sm:$0xff] }
 0x11e   : > { %1544 = vmatpush1.bf16.msra.mxu0 %v1543_v6  ;;  %1299 = vmatprep.mubr.msk.f32.mxu0 %vm487_vm0, %v583_v11  ;;  %v772_v6 = vrot.slane %v2011_v4, 3  ;;  %v1342_v11 = vld [vmem:[%s2412_s3 + $0x260] sm:$0xff]  ;;  %v1660_v44 = vpack.c.bf16 %v1364_v43, %v1363_v5  ;;  %v1136_v43 = vld [vmem:[%s2416_s7 + $0x48] sm:$0xff] }
 0x11f   : > { %1318 = vmatprep.mubr.msk.f32.mxu1 %vm487_vm0, %v678_v12  ;;  %1545 = vmatprep.subr.bf16.mxu0 %v1755_v1  ;;  %v1343_v12 = vld [vmem:[%s2412_s3 + $0x268] sm:$0xff]  ;;  %v1135_v5 = vld [vmem:[%s2416_s7 + $0x40] sm:$0xff] }
 0x120   : > { %747 = vmatmul.mubr.f32.vlgmr.msra.gmra.mrb[0].mxu1 %v677_v14  ;;  %v1344_v14 = vld [vmem:[%s2412_s3 + $0x270] sm:$0xff] }
 0x121   : > { %1598 = vmatpush1.bf16.msra.mxu1 %v1597_v13  ;;  %1337 = vmatprep.mubr.msk.f32.mxu1 %vm487_vm0, %v773_v18  ;;  %v1630_v13 = vpack.c.bf16 %v1343_v12, %v1342_v11  ;;  %v1347_v18 = vld [vmem:[%s2412_s3 + $0x288] sm:$0xff]  ;;  %v1047_v12 = vld [vmem:[%s2414_s5 + $0x40] sm:$0xff] }
 0x122   : > { %1547 = vmatpush1.bf16.msra.mxu0 %v1546_v15  ;;  %1599 = vmatprep.subr.bf16.mxu1 %v1755_v1  ;;  %v1345_v15 = vld [vmem:[%s2412_s3 + $0x278] sm:$0xff]  ;;  %v1636_v19 = vpack.c.bf16 %v1347_v18, %v1346_v17  ;;  %v1051_v18 = vld [vmem:[%s2414_s5 + $0x60] sm:$0xff] }
 0x123   : > { %1548 = vmatprep.subr.bf16.mxu0 %v1755_v1  ;;  %v1633_v16 = vpack.c.bf16 %v1345_v15, %v1344_v14  ;;  %v1049_v15 = vld [vmem:[%s2414_s5 + $0x50] sm:$0xff] }
 0x125   : > { %1601 = vmatpush1.bf16.msra.mxu1 %v1600_v21  ;;  %v1349_v21 = vld [vmem:[%s2412_s3 + $0x298] sm:$0xff] }
 0x126   : > { %1550 = vmatpush1.bf16.msra.mxu0 %v1549_v22  ;;  %1602 = vmatprep.subr.bf16.mxu1 %v1755_v1  ;;  %v1639_v22 = vpack.c.bf16 %v1349_v21, %v1348_v20  ;;  %v1053_v21 = vld [vmem:[%s2414_s5 + $0x70] sm:$0xff] }
 0x127   : > { %1551 = vmatprep.subr.bf16.mxu0 %v1755_v1 }
 0x129   : > { %1604 = vmatpush1.bf16.msra.mxu1 %v1603_v27  ;;  %v1353_v27 = vld [vmem:[%s2412_s3 + $0x2b8] sm:$0xff] }
 0x12a   : > { %1553 = vmatpush1.bf16.msra.mxu0 %v1552_v28  ;;  %1605 = vmatprep.subr.bf16.mxu1 %v1755_v1  ;;  %v1645_v28 = vpack.c.bf16 %v1353_v27, %v1352_v26  ;;  %v468_v26 = vld [vmem:[%s2413_s4] sm:$0x1] }
 0x12b   : > { %1554 = vmatprep.subr.bf16.mxu0 %v1755_v1 }
 0x12d   : > { %1607 = vmatpush1.bf16.msra.mxu1 %v1606_v33  ;;  %v1358_v33 = vld [vmem:[%s2412_s3 + $0x2d8] sm:$0xff] }
 0x12e   : > { %1556 = vmatpush1.bf16.msra.mxu0 %v1555_v34  ;;  %1608 = vmatprep.subr.bf16.mxu1 %v1755_v1  ;;  %v1651_v34 = vpack.c.bf16 %v1358_v33, %v1357_v32 }
 0x12f   : > { %1557 = vmatprep.subr.bf16.mxu0 %v1755_v1 }
 0x131   : > { %1610 = vmatpush1.bf16.msra.mxu1 %v1609_v39  ;;  %v1654_v39 = vpack.c.bf16 %v1360_v37, %v1359_v36  ;;  %v1130_v36 = vld [vmem:[%s2416_s7 + $0x18] sm:$0xff] }
 0x132   : > { %1559 = vmatpush1.bf16.msra.mxu0 %v1558_v40  ;;  %1611 = vmatprep.subr.bf16.mxu1 %v1755_v1  ;;  %v1361_v40 = vld [vmem:[%s2412_s3 + $0x2f0] sm:$0xff] }
 0x133   : > { %1560 = vmatprep.subr.bf16.mxu0 %v1755_v1  ;;  %v1657_v42 = vpack.c.bf16 %v1362_v41, %v1361_v40  ;;  %v1133_v41 = vld [vmem:[%s2416_s7 + $0x30] sm:$0xff] }
 0x135   : > { %1613 = vmatpush1.bf16.msra.mxu1 %v1612_v45  ;;  %v1365_v45 = vld [vmem:[%s2412_s3 + $0x310] sm:$0xff] }
 0x136   : > { %1562 = vmatpush1.bf16.msra.mxu0 %v1561_v46  ;;  %1614 = vmatprep.subr.bf16.mxu1 %v1755_v1  ;;  %v1366_v46 = vld [vmem:[%s2412_s3 + $0x318] sm:$0xff] }
 0x137   : > { %1563 = vmatprep.subr.bf16.mxu0 %v1755_v1  ;;  %v1663_v47 = vpack.c.bf16 %v1366_v46, %v1365_v45  ;;  %v1137_v45 = vld [vmem:[%s2416_s7 + $0x50] sm:$0xff]  ;;  %v1138_v46 = vld [vmem:[%s2416_s7 + $0x58] sm:$0xff] }
 0x139   : > { %1616 = vmatpush1.bf16.msra.mxu1 %v1615_v51  ;;  %v1369_v51 = vld [vmem:[%s2412_s3 + $0x330] sm:$0xff] }
 0x13a   : > { %1565 = vmatpush1.bf16.msra.mxu0 %v1564_v52  ;;  %1617 = vmatprep.subr.bf16.mxu1 %v1755_v1  ;;  %v1370_v52 = vld [vmem:[%s2412_s3 + $0x338] sm:$0xff] }
 0x13b   : > { %1566 = vmatprep.subr.bf16.mxu0 %v1755_v1  ;;  %v1669_v53 = vpack.c.bf16 %v1370_v52, %v1369_v51  ;;  %v1141_v51 = vld [vmem:[%s2416_s7 + $0x70] sm:$0xff]  ;;  %v1142_v52 = vld [vmem:[%s2416_s7 + $0x78] sm:$0xff] }
 0x13d   : > { %1619 = vmatpush1.bf16.msra.mxu1 %v1618_v57  ;;  %v1373_v57 = vld [vmem:[%s2412_s3 + $0x350] sm:$0xff] }
 0x13e   : > { %1568 = vmatpush1.bf16.msra.mxu0 %v1567_v58  ;;  %1620 = vmatprep.subr.bf16.mxu1 %v1755_v1  ;;  %v1374_v58 = vld [vmem:[%s2412_s3 + $0x358] sm:$0xff] }
 0x13f   : > { %1677 = vmatprep.subr.bf16.mxu0 %v1755_v1  ;;  %v1675_v59 = vpack.c.bf16 %v1374_v58, %v1373_v57 }
 0x141   : > { %1622 = vmatpush1.bf16.msra.mxu1 %v1621_v61  ;;  %652 = vmatmul.mubr.f32.vlgmr.msra.gmra.mrb[8].mxu0 %v582_v2  ;;  %v1039_v61 = vld [vmem:[%s2414_s5] sm:$0xff] }
 0x142   : > { %1623 = vmatprep.subr.bf16.mxu1 %v1755_v1  ;;  %v1678_v2 = vpack.c.bf16 %v1040_v62, %v1039_v61  ;;  %1445 = vmatprep.mubr.msk.f32.mxu0 %vm1756_vm1, %v1754_v0 }
 0x144   : > { %842 = vmatmul.mubr.f32.vlgmr.msra.gmra.mrb[0].mxu1 %v772_v6  ;;  %1679 = vmatpush3.bf16.msra.mxu0 %v1678_v2  ;;  %v1043_v6 = vld [vmem:[%s2414_s5 + $0x20] sm:$0xff] }
 0x145   : > { %1625 = vmatpush1.bf16.msra.mxu1 %v1624_v3  ;;  %1356 = vmatprep.mubr.msk.f32.mxu1 %vm487_vm0, %v868_v9  ;;  %v1042_v3 = vld [vmem:[%s2414_s5 + $0x18] sm:$0xff]  ;;  %v1684_v8 = vpack.c.bf16 %v1044_v7, %v1043_v6  ;;  %v1045_v9 = vld [vmem:[%s2414_s5 + $0x30] sm:$0xff] }
 0x146   : > { %1626 = vmatprep.subr.bf16.mxu1 %v1755_v1  ;;  %v1681_v4 = vpack.c.bf16 %v1042_v3, %v1041_v63  ;;  %1680 = vmatprep.subr.bf16.mxu0 %v1755_v1 }
 0x148   : > { %1682 = vmatpush3.bf16.msra.mxu0 %v1681_v4 }
 0x149   : > { %1628 = vmatpush1.bf16.msra.mxu1 %v1627_v10  ;;  %1683 = vmatprep.subr.bf16.mxu0 %v1755_v1  ;;  %v1046_v10 = vld [vmem:[%s2414_s5 + $0x38] sm:$0xff] }
 0x14a   : > { %1629 = vmatprep.subr.bf16.mxu1 %v1755_v1  ;;  %v1687_v11 = vpack.c.bf16 %v1046_v10, %v1045_v9 }
 0x14c   : > { %1685 = vmatpush3.bf16.msra.mxu0 %v1684_v8 }
 0x14d   : > { %1631 = vmatpush1.bf16.msra.mxu1 %v1630_v13  ;;  %1686 = vmatprep.subr.bf16.mxu0 %v1755_v1  ;;  %v1048_v13 = vld [vmem:[%s2414_s5 + $0x48] sm:$0xff] }
 0x14e   : > { %1632 = vmatprep.subr.bf16.mxu1 %v1755_v1  ;;  %v1690_v14 = vpack.c.bf16 %v1048_v13, %v1047_v12 }
 0x150   : > { %1688 = vmatpush3.bf16.msra.mxu0 %v1687_v11 }
 0x151   : > { %1634 = vmatpush1.bf16.msra.mxu1 %v1633_v16  ;;  %1689 = vmatprep.subr.bf16.mxu0 %v1755_v1  ;;  %v1050_v16 = vld [vmem:[%s2414_s5 + $0x58] sm:$0xff] }
 0x152   : > { %1635 = vmatprep.subr.bf16.mxu1 %v1755_v1  ;;  %v1693_v17 = vpack.c.bf16 %v1050_v16, %v1049_v15 }
 0x154   : > { %1691 = vmatpush3.bf16.msra.mxu0 %v1690_v14 }
 0x155   : > { %1637 = vmatpush1.bf16.msra.mxu1 %v1636_v19  ;;  %1692 = vmatprep.subr.bf16.mxu0 %v1755_v1  ;;  %v1052_v19 = vld [vmem:[%s2414_s5 + $0x68] sm:$0xff] }
 0x156   : > { %1638 = vmatprep.subr.bf16.mxu1 %v1755_v1  ;;  %v1696_v20 = vpack.c.bf16 %v1052_v19, %v1051_v18 }
 0x158   : > { %1694 = vmatpush3.bf16.msra.mxu0 %v1693_v17 }
 0x159   : > { %1640 = vmatpush1.bf16.msra.mxu1 %v1639_v22  ;;  %1695 = vmatprep.subr.bf16.mxu0 %v1755_v1  ;;  %v1054_v22 = vld [vmem:[%s2414_s5 + $0x78] sm:$0xff] }
 0x15a   : > { %1641 = vmatprep.subr.bf16.mxu1 %v1755_v1  ;;  %v1699_v23 = vpack.c.bf16 %v1054_v22, %v1053_v21 }
 0x15c   : > { %1697 = vmatpush3.bf16.msra.mxu0 %v1696_v20 }
 0x15d   : > { %1643 = vmatpush1.bf16.msra.mxu1 %v1642_v25  ;;  %1698 = vmatprep.subr.bf16.mxu0 %v1755_v1 }
 0x15e   : > { %1644 = vmatprep.subr.bf16.mxu1 %v1755_v1 }
 0x160   : > { %1700 = vmatpush3.bf16.msra.mxu0 %v1699_v23 }
 0x161   : > { %1646 = vmatpush1.bf16.msra.mxu1 %v1645_v28  ;;  %1701 = vmatprep.subr.bf16.mxu0 %v1755_v1  ;;  %v1127_v28 = vld [vmem:[%s2416_s7] sm:$0xff] }
 0x162   : > { %1647 = vmatprep.subr.bf16.mxu1 %v1755_v1  ;;  %v1702_v33 = vpack.c.bf16 %v1128_v29, %v1127_v28 }
 0x165   : > { %1649 = vmatpush1.bf16.msra.mxu1 %v1648_v31 }
 0x166   : > { %1650 = vmatprep.subr.bf16.mxu1 %v1755_v1 }
 0x168   : > { %937 = vmatmul.mubr.f32.vlgmr.msra.gmra.mrb[0].mxu1 %v867_v35  ;;  %v1129_v35 = vld [vmem:[%s2416_s7 + $0x10] sm:$0xff] }
 0x169   : > { %1652 = vmatpush1.bf16.msra.mxu1 %v1651_v34  ;;  %1375 = vmatprep.mubr.msk.f32.mxu1 %vm487_vm0, %v963_v38  ;;  %v1705_v37 = vpack.c.bf16 %v1130_v36, %v1129_v35  ;;  %v1131_v38 = vld [vmem:[%s2416_s7 + $0x20] sm:$0xff] }
 0x16a   : > { %1653 = vmatprep.subr.bf16.mxu1 %v1755_v1 }
 0x16d   : > { %1655 = vmatpush1.bf16.msra.mxu1 %v1654_v39  ;;  %v1132_v39 = vld [vmem:[%s2416_s7 + $0x28] sm:$0xff] }
 0x16e   : > { %1656 = vmatprep.subr.bf16.mxu1 %v1755_v1  ;;  %v1708_v40 = vpack.c.bf16 %v1132_v39, %v1131_v38 }
 0x171   : > { %1658 = vmatpush1.bf16.msra.mxu1 %v1657_v42 }
 0x172   : > { %1659 = vmatprep.subr.bf16.mxu1 %v1755_v1 }
 0x175   : > { %1661 = vmatpush1.bf16.msra.mxu1 %v1660_v44  ;;  %v1714_v44 = vpack.c.bf16 %v1136_v43, %v1135_v5 }
 0x176   : > { %1662 = vmatprep.subr.bf16.mxu1 %v1755_v1 }
 0x179   : > { %1664 = vmatpush1.bf16.msra.mxu1 %v1663_v47  ;;  %v1717_v47 = vpack.c.bf16 %v1138_v46, %v1137_v45 }
 0x17a   : > { %1665 = vmatprep.subr.bf16.mxu1 %v1755_v1 }
 0x17d   : > { %1667 = vmatpush1.bf16.msra.mxu1 %v1666_v50  ;;  %v1720_v50 = vpack.c.bf16 %v1140_v49, %v1139_v48 }
 0x17e   : > { %1668 = vmatprep.subr.bf16.mxu1 %v1755_v1 }
 0x181   : > { %1670 = vmatpush1.bf16.msra.mxu1 %v1669_v53  ;;  %v1723_v53 = vpack.c.bf16 %v1142_v52, %v1141_v51 }
 0x182   : > { %1671 = vmatprep.subr.bf16.mxu1 %v1755_v1 }
 0x185   : > { %1673 = vmatpush1.bf16.msra.mxu1 %v1672_v56 }
 0x186   : > { %1674 = vmatprep.subr.bf16.mxu1 %v1755_v1 }
 0x189   : > { %1676 = vmatpush1.bf16.msra.mxu1 %v1675_v59 }
 0x18c   : > { %1032 = vmatmul.mubr.f32.vlgmr.msra.gmra.mrb[0].mxu1 %v962_v60  ;;  %v1143_v60 = vld [vmem:[%s2417_s8] sm:$0x1] }
 0x214   : > { %v653_v24 = vpop.f32.mrb[8].mxu0 }
 0x215   : > { %v655_v25 = vpop.f32.mrb[9].mxu0  ;;  %v1725_v27 = vadd.f32 %v653_v24, %v468_v26 }
 0x25f   : > { %v1033_v30 = vpop.f32.mrb[0].mxu1 }
 0x260   : > { %v1726_v31 = vadd.f32 %v1725_v27, %v1033_v30  ;;  %v1035_v32 = vpop.f32.mrb[1].mxu1 }
 0x262   : > { %v1038_v34 = vmax.f32 %v1726_v31, 0.0 }
 0x264   : > { %1446 = vmatmul.mubr.f32.vlgmr.msra.gmra.mrb[10].mxu0 %v1038_v34 }
 0x265   : > { %1703 = vmatpush3.bf16.msra.mxu0 %v1702_v33  ;;  %1480 = vmatprep.mubr.msk.f32.mxu0 %vm1756_vm1, %v1754_v0  ;;  %v1134_v0 = vld [vmem:[%s2416_s7 + $0x38] sm:$0xff] }
 0x266   : > { %1704 = vmatprep.subr.bf16.mxu0 %v1755_v1  ;;  %v1711_v42 = vpack.c.bf16 %v1134_v0, %v1133_v41 }
 0x269   : > { %1706 = vmatpush3.bf16.msra.mxu0 %v1705_v37 }
 0x26a   : > { %1707 = vmatprep.subr.bf16.mxu0 %v1755_v1 }
 0x26d   : > { %1709 = vmatpush3.bf16.msra.mxu0 %v1708_v40 }
 0x26e   : > { %1710 = vmatprep.subr.bf16.mxu0 %v1755_v1 }
 0x271   : > { %1712 = vmatpush3.bf16.msra.mxu0 %v1711_v42 }
 0x272   : > { %1713 = vmatprep.subr.bf16.mxu0 %v1755_v1 }
 0x275   : > { %1715 = vmatpush3.bf16.msra.mxu0 %v1714_v44 }
 0x276   : > { %1716 = vmatprep.subr.bf16.mxu0 %v1755_v1 }
 0x279   : > { %1718 = vmatpush3.bf16.msra.mxu0 %v1717_v47 }
 0x27a   : > { %1719 = vmatprep.subr.bf16.mxu0 %v1755_v1 }
 0x27d   : > { %1721 = vmatpush3.bf16.msra.mxu0 %v1720_v50 }
 0x27e   : > { %1722 = vmatprep.subr.bf16.mxu0 %v1755_v1  ;;  %v1214_v1 = vlaneseq }
 0x280   : > { %v1215_v59 = vshrl.u32 %v1214_v1, 7 }
 0x281   : > { %1724 = vmatpush3.bf16.msra.mxu0 %v1723_v53 }
 0x282   : > { %v1216_v61 = vsub.s32 0, %v1215_v59 }
 0x337   : > { %v1122_v55 = vpop.f32.mrb[10].mxu0 }
 0x338   : > { %v1123_v56 = vadd.f32 %v1122_v55, %v1055_v54  ;;  %v1447_v57 = vpop.f32.mrb[11].mxu0 }
 0x33a   : > { %v1126_v58 = vmax.f32 %v1123_v56, 0.0 }
 0x33c   : > { %1481 = vmatmul.mubr.f32.vlgmr.msra.gmra.mrb[12].mxu0 %v1126_v58 }
 0x40f   : > { %v1210_v62 = vpop.f32.mrb[12].mxu0 }
 0x410   : > { %v1211_v63 = vadd.f32 %v1210_v62, %v1143_v60  ;;  %v1482_v2 = vpop.f32.mrb[13].mxu0 }
 0x412   : > { %v1217_v3 = vrot.slane %v1211_v63, %v1216_v61 }
 0x414   : > { %1218 = vst [vmem:[%s330_s12] sm:$0xff] %v1217_v3 }
 0x415 PF: > { %s19_s30 = sadd.s32 1, %s1752_s30  }
 0x416   : > { %p16_p4 = scmp.ge.s32.totalorder %s19_s30, 4  }
 0x418   :  { %18 = sbr.rel (!%p16_p4) target bundleno = 1 (0x1), region = 91 }

</bundles_post_ra>
